<compile_context>
chip_gen: v7x
topology: tpu7x:2x2x1
jax: 0.10.0
libtpu: 0.0.40
codegen_flags: <defaults>
</compile_context>

<pallas_src>
import jax
import jax.numpy as jnp
import numpy as np
from jax.experimental import pallas as pl
from jax.experimental.pallas import tpu as pltpu

NHIDDEN = 512
NOUT = 128


def _round_up(n, m):
    return ((n + m - 1) // m) * m


def f2_kernel(x_ref, w2_ref, b2_ref, w3_ref, b3_ref, o_ref):
    # In-kernel cast of the x tile to the weight dtype (bf16 on the perf path);
    # avoids a separate wrapper-side HBM pass over x.
    x = x_ref[...].astype(w2_ref.dtype)
    # dense2 (MXU, f32 accumulate) + f32 bias + f32 tanh (EUP).
    h = jnp.tanh(
        jnp.dot(x, w2_ref[...], preferred_element_type=jnp.float32) + b2_ref[...]
    )
    # dense3 (MXU, f32 accumulate) + f32 bias.
    y = (
        jnp.dot(h.astype(w3_ref.dtype), w3_ref[...],
                preferred_element_type=jnp.float32)
        + b3_ref[...]
    )
    o_ref[...] = y.astype(o_ref.dtype)


def _choose_tile(B, tm):
    # Never larger than the batch (sublane-rounded down), minimum 8 rows.
    tm_eff = min(tm, max(8, (B // 8) * 8))
    # Keep >=2 grid steps when the batch is big enough that splitting beats the
    # per-step overhead — lets ("parallel",) shard across v7x's 2 TensorCores.
    if B >= 256:
        tm_eff = min(tm_eff, _round_up(-(-B // 2), 8))
    return tm_eff


def f2_pallas(x, w2t, b2, w3t, b3, *, tm=512, out_dtype=jnp.float32):
    """Fused dense2 -> tanh -> dense3.

    Weights are passed pre-transposed as (in, out); pass them as bf16 for the
    MXU fast path (cast them once at init, not per call).  Biases stay f32.
    The kernel keeps weights VMEM-resident across the batch grid.
    """
    B, E = x.shape
    assert E == NHIDDEN, "forward requires encoding_size == nhidden (512)"

    tm_eff = _choose_tile(B, tm)
    grid = (pl.cdiv(B, tm_eff),)  # ragged last block handled by Pallas; no pad

    resident = lambda shape: pl.BlockSpec(shape, lambda i: (0, 0))

    out = pl.pallas_call(
        f2_kernel,
        out_shape=jax.ShapeDtypeStruct((B, NOUT), out_dtype),
        grid_spec=pl.GridSpec(
            grid=grid,
            in_specs=[
                pl.BlockSpec((tm_eff, E), lambda i: (i, 0)),  # x tile
                resident((E, NHIDDEN)),                       # W2^T (resident)
                resident((1, NHIDDEN)),                       # b2   (f32)
                resident((NHIDDEN, NOUT)),                    # W3^T (resident)
                resident((1, NOUT)),                          # b3   (f32)
            ],
            out_specs=pl.BlockSpec((tm_eff, NOUT), lambda i: (i, 0)),
        ),
        compiler_params=pltpu.CompilerParams(
            dimension_semantics=("parallel",),
        ),
    )(x, w2t, b2, w3t, b3)

    return out


def prepare_bf16_params(w2t, w3t):
    """Cast matmul weights to bf16 ONCE (cache the result; do not cast per call)."""
    return w2t.astype(jnp.bfloat16), w3t.astype(jnp.bfloat16)


def f2_reference(x, w1t, b1, w2t, b2, w3t, b3):
    # Mirrors the PyTorch module exactly, including the discarded dense1 result.
    _dead = jnp.tanh(x @ w1t + b1)
    del _dead
    h = jnp.tanh(x @ w2t + b2)
    return h @ w3t + b3


def init_params(key, encoding_size):
    # Deterministic init mimicking nn.Linear's uniform(-1/sqrt(fan_in), +).
    ks = jax.random.split(key, 6)

    def linear(kw, kb, fan_in, fan_out):
        bound = 1.0 / np.sqrt(fan_in)
        w = jax.random.uniform(kw, (fan_out, fan_in), jnp.float32, -bound, bound)
        b = jax.random.uniform(kb, (fan_out,), jnp.float32, -bound, bound)
        return w, b

    w1, b1 = linear(ks[0], ks[1], encoding_size, NHIDDEN)
    w2, b2 = linear(ks[2], ks[3], NHIDDEN, NHIDDEN)
    w3, b3 = linear(ks[4], ks[5], NHIDDEN, NOUT)
    # Pre-transpose weights to (in, out); biases as (1, out) lane-dense rows.
    return (w1.T, b1[None, :], w2.T, b2[None, :], w3.T, b3[None, :])


if __name__ == "__main__":
    key = jax.random.PRNGKey(0)
    kx, kp = jax.random.split(key)

    encoding_size = NHIDDEN  # required by the module's forward (dense2(x))
    batch = 12               # non-multiple of 8: exercises the ragged last block
    x = jax.random.normal(kx, (batch, encoding_size), jnp.float32)

    w1t, b1, w2t, b2, w3t, b3 = init_params(kp, encoding_size)
    ref = f2_reference(x, w1t, b1, w2t, b2, w3t, b3)

    # Accuracy path (f32 weights) — tight tolerance vs. the reference.
    out_f32 = jax.block_until_ready(f2_pallas(x, w2t, b2, w3t, b3))
    np.testing.assert_allclose(np.asarray(out_f32), np.asarray(ref),
                               rtol=1e-5, atol=1e-5)

    # Performance path (bf16 weights, cast once; x cast in-kernel; f32 accum).
    w2t_bf, w3t_bf = prepare_bf16_params(w2t, w3t)
    out_bf = jax.block_until_ready(f2_pallas(x, w2t_bf, b2, w3t_bf, b3))
    np.testing.assert_allclose(np.asarray(out_bf), np.asarray(ref),
                               rtol=3e-2, atol=3e-2)

    assert out_f32.shape == (batch, NOUT) and out_bf.shape == (batch, NOUT)
    print("KERNEL_OK")
</pallas_src>

<mosaic_0001>
module attributes {stable_mosaic.version = 11 : i64} {
  func.func @f2_kernel(%arg0: i32, %arg1: memref<8x512xf32, #tpu.memory_space<vmem>>, %arg2: memref<512x512xf32, #tpu.memory_space<vmem>>, %arg3: memref<1x512xf32, #tpu.memory_space<vmem>>, %arg4: memref<512x128xf32, #tpu.memory_space<vmem>>, %arg5: memref<1x128xf32, #tpu.memory_space<vmem>>, %arg6: memref<8x128xf32, #tpu.memory_space<vmem>>) attributes {dimension_semantics = [#tpu.dimension_semantics<parallel>], iteration_bounds = array<i64: 2>, scalar_prefetch = 0 : i64, scratch_operands = 0 : i64, tpu.core_type = #tpu.core_type<tc>, window_params = [{transform_indices = @transform_0, window_bounds = array<i64: 8, 512>}, {pipeline_mode = #tpu.pipeline_mode<synchronous>, transform_indices = @transform_1, window_bounds = array<i64: 512, 512>}, {pipeline_mode = #tpu.pipeline_mode<synchronous>, transform_indices = @transform_2, window_bounds = array<i64: 1, 512>}, {pipeline_mode = #tpu.pipeline_mode<synchronous>, transform_indices = @transform_3, window_bounds = array<i64: 512, 128>}, {pipeline_mode = #tpu.pipeline_mode<synchronous>, transform_indices = @transform_4, window_bounds = array<i64: 1, 128>}, {transform_indices = @transform_5, window_bounds = array<i64: 8, 128>}]} {
    %c0 = arith.constant 0 : index
    %c0_0 = arith.constant 0 : index
    %0 = vector.load %arg1[%c0, %c0_0] : memref<8x512xf32, #tpu.memory_space<vmem>>, vector<8x512xf32>
    %c0_1 = arith.constant 0 : index
    %c0_2 = arith.constant 0 : index
    %1 = vector.load %arg2[%c0_1, %c0_2] : memref<512x512xf32, #tpu.memory_space<vmem>>, vector<512x512xf32>
    %cst = arith.constant dense<0.000000e+00> : vector<8x512xf32>
    %2 = tpu.matmul %0, %1, %cst {dimension_numbers = #tpu.dot_dimension_numbers<[1], [0], [0], [1], [0, 0, 1, 1], [], []>} : vector<8x512xf32>, vector<512x512xf32>, vector<8x512xf32> -> vector<8x512xf32>
    %c0_3 = arith.constant 0 : index
    %c0_4 = arith.constant 0 : index
    %3 = vector.load %arg3[%c0_3, %c0_4] : memref<1x512xf32, #tpu.memory_space<vmem>>, vector<1x512xf32>
    %4 = vector.broadcast %3 : vector<1x512xf32> to vector<8x512xf32>
    %5 = arith.addf %2, %4 : vector<8x512xf32>
    %6 = math.tanh %5 : vector<8x512xf32>
    %c0_5 = arith.constant 0 : index
    %c0_6 = arith.constant 0 : index
    %7 = vector.load %arg4[%c0_5, %c0_6] : memref<512x128xf32, #tpu.memory_space<vmem>>, vector<512x128xf32>
    %cst_7 = arith.constant dense<0.000000e+00> : vector<8x128xf32>
    %8 = tpu.matmul %6, %7, %cst_7 {dimension_numbers = #tpu.dot_dimension_numbers<[1], [0], [0], [1], [0, 0, 1, 1], [], []>} : vector<8x512xf32>, vector<512x128xf32>, vector<8x128xf32> -> vector<8x128xf32>
    %c0_8 = arith.constant 0 : index
    %c0_9 = arith.constant 0 : index
    %9 = vector.load %arg5[%c0_8, %c0_9] : memref<1x128xf32, #tpu.memory_space<vmem>>, vector<1x128xf32>
    %10 = vector.broadcast %9 : vector<1x128xf32> to vector<8x128xf32>
    %11 = arith.addf %8, %10 : vector<8x128xf32>
    %c0_10 = arith.constant 0 : index
    %c0_11 = arith.constant 0 : index
    %12 = vector.load %arg6[%c0_10, %c0_11] : memref<8x128xf32, #tpu.memory_space<vmem>>, vector<8x128xf32>
    tpu.vector_store %arg6[%c0_10, %c0_11], %11 {strides = array<i32>} : memref<8x128xf32, #tpu.memory_space<vmem>>, vector<8x128xf32>,
    return
  }
  func.func @transform_0(%arg0: i32) -> (i32, i32) {
    %c0_i32 = arith.constant 0 : i32
    %c0_i32_0 = arith.constant 0 : i32
    return %arg0, %c0_i32 : i32, i32
  }
  func.func @transform_1(%arg0: i32) -> (i32, i32) {
    %c0_i32 = arith.constant 0 : i32
    %c0_i32_0 = arith.constant 0 : i32
    %c0_i32_1 = arith.constant 0 : i32
    return %c0_i32, %c0_i32_0 : i32, i32
  }
  func.func @transform_2(%arg0: i32) -> (i32, i32) {
    %c0_i32 = arith.constant 0 : i32
    %c0_i32_0 = arith.constant 0 : i32
    %c0_i32_1 = arith.constant 0 : i32
    return %c0_i32, %c0_i32_0 : i32, i32
  }
  func.func @transform_3(%arg0: i32) -> (i32, i32) {
    %c0_i32 = arith.constant 0 : i32
    %c0_i32_0 = arith.constant 0 : i32
    %c0_i32_1 = arith.constant 0 : i32
    return %c0_i32, %c0_i32_0 : i32, i32
  }
  func.func @transform_4(%arg0: i32) -> (i32, i32) {
    %c0_i32 = arith.constant 0 : i32
    %c0_i32_0 = arith.constant 0 : i32
    %c0_i32_1 = arith.constant 0 : i32
    return %c0_i32, %c0_i32_0 : i32, i32
  }
  func.func @transform_5(%arg0: i32) -> (i32, i32) {
    %c0_i32 = arith.constant 0 : i32
    %c0_i32_0 = arith.constant 0 : i32
    return %arg0, %c0_i32 : i32, i32
  }
}

</mosaic_0001>

<bundles_post_ra>
// kernel: tpu_custom_call.1
= control target key start
LH: loop header
LB: loop body
LE: loop exit
PB: predicated region body
PF: predicated region fallthrough
CT: control target
= control target key end

     0   :  { %10 = vsyncpa [#allocation3], 0  ;;  %s2089_s0 = inlined_call_operand.hbm [shape: f32[12,512], index: 0, kind: input, shape index: {}]   ;;  %s2090_s1 = inlined_call_operand.hbm [shape: f32[512,512], index: 1, kind: input, shape index: {}]   ;;  %s2091_s2 = inlined_call_operand.vmem [shape: f32[1,512], index: 2, kind: input, shape index: {}]   ;;  %s2092_s3 = inlined_call_operand.hbm [shape: f32[512,128], index: 3, kind: input, shape index: {}]   ;;  %s2093_s4 = inlined_call_operand.vmem [shape: f32[1,128], index: 4, kind: input, shape index: {}]   ;;  %s2094_s5 = inlined_call_operand.hbm [shape: f32[12,128], index: 5, kind: output, shape index: {}]  }
   0x1   :  { %12 = vsyncpa [#allocation3 + $0x1], 0 }
   0x2   :  { %13 = vsyncpa [#allocation6], 0 }
   0x3   :  { %14 = vsyncpa [#allocation4], 0 }
   0x4   :  { %16 = vsyncpa [#allocation4 + $0x1], 0  ;;  %s1847_s18 = smov 0   ;;  %s1849_s19 = smov 0  }
   0x5   :  { %s1851_s20 = smov 0   ;;  %s1853_s21 = smov 0  }
   0x6 LB: > { %s1868_s22 = sadd.s32 4294967295, %s1807_s21   ;;  %s1155_s23 = sadd.s32 4294967294, %s1807_s21   ;;  %s1807_s21 = sphi %s1853_s21, %s2114_s21   ;;  %s1803_s20 = sphi %s1851_s20, %s2113_s20   ;;  %s1799_s19 = sphi %s1849_s19, %s2112_s19   ;;  %s1795_s18 = sphi %s1847_s18, %s2111_s18  }
   0x7   : > { %p42_p0 = scmp.ne.s32.totalorder %s1799_s19, %s1795_s18  ;;  %p2095_p1 = scmp.eq.s32.totalorder %s1868_s22, 0 }
   0x8   : > { %p156_p3 = scmp.eq.s32.totalorder %s1155_s23, 1  ;;  %p1156_p5 = scmp.ge.s32.totalorder %s1807_s21, 1 }
   0x9   : > { %p1877_p4 = por %p2095_p1, %p42_p0  ;;  %p163_p7 = scmp.lt.s32.totalorder %s1807_s21, 3 }
   0xa   : > { %p1882_p6 = por %p156_p3, %p42_p0  ;;  %s1809_s27 = smov [#allocation5]  }
   0xb   : > { %s2098_s24 = scalar_select %p1877_p4, 1, 0 }
   0xc   : > { %s2099_s25 = scalar_select %p1882_p6, 1, 0 }
   0xd   : > { %p1887_p8 = pnand %p1156_p5, %p163_p7  ;;  %s175_s28 = sshll.u32 %s1809_s27, 4  ;;  %s1891_s28 = int_to_ptr.vmem [resolvable:$true] %s175_s28 }
   0xe   : > { %s1810_s30 = smov [#allocation7]   ;;  %s1651_s9 = scalar_lea.hbm %s2090_s1, 32768 }
   0xf   : > { %p1584_p9 = pneg %p1887_p8  ;;  %s191_s6 = sshll.u32 %s1810_s30, 4  ;;  %s1902_s6 = int_to_ptr.vmem [resolvable:$true] %s191_s6 }
  0x10   : > { %p1652_p12 = scmp.ne.s32.totalorder %s2090_s1, %s1651_s9  ;;  %p1658_p5 = scmp.lt.u32.totalorder %s1651_s9, %s2090_s1 }
  0x11   : > { %p1898_p11 = pnand %p1584_p9, %p2095_p1 }
  0x13   : > { %p1653_p13 = pneg %p1898_p11 }
  0x15   : > { %p1654_p0 = pnand %p1653_p13, %p1652_p12 }
  0x17   : > { %p1655_p3 = pneg %p1654_p0 }
  0x19   : > { %p1660_p7 = pnand %p1658_p5, %p1655_p3 }
  0x1b   : > { %1663 = shalt.err (!%p1660_p7)
}
  0x1c   : > { %s1664_s14 = scalar_lea.vmem %s1891_s28, 32768  ;;  %p1672_p2 = scmp.lt.s32.totalorder %s1891_s28, %s1891_s28 }
  0x1d   : > { %p1665_p9 = scmp.ne.s32.totalorder %s1891_s28, %s1664_s14  ;;  %p1673_p12 = scmp.lt.s32.totalorder %s1664_s14, %s1664_s14 }
  0x1f   : > { %p1667_p10 = pnand %p1665_p9, %p1653_p13  ;;  %p1674_p0 = por %p1673_p12, %p1672_p2 }
  0x21   : > { %p1668_p1 = pneg %p1667_p10 }
  0x23   : > { %p1675_p6 = pnand %p1674_p0, %p1668_p1 }
  0x25   : > { %1678 = shalt.err (!%p1675_p6)
}
  0x26   : > { %s1811_s15 = smov 512   ;;  %s1812_s16 = smov 32  }
  0x27   : > { %1587 = dma.hbm_to_vmem [thread:$0]  (!%p1898_p11), %s2090_s1, 32768, %s1891_s28, [#allocation6], %s1811_s15, %s1811_s15, %s1812_s16  }
  0x28   : > { %s1679_s7 = scalar_lea.hbm %s2092_s3, 8192 }
  0x29   : > { %p1680_p2 = scmp.ne.s32.totalorder %s2092_s3, %s1679_s7  ;;  %p1686_p10 = scmp.lt.u32.totalorder %s1679_s7, %s2092_s3 }
  0x2b   : > { %p1682_p1 = pnand %p1680_p2, %p1653_p13 }
  0x2d   : > { %p1683_p6 = pneg %p1682_p1 }
  0x2f   : > { %p1688_p3 = pnand %p1686_p10, %p1683_p6 }
  0x31   : > { %1691 = shalt.err (!%p1688_p3)
}
  0x32   : > { %s1692_s28 = scalar_lea.vmem %s1902_s6, 8192  ;;  %p1700_p12 = scmp.lt.s32.totalorder %s1902_s6, %s1902_s6 }
  0x33   : > { %p1693_p5 = scmp.ne.s32.totalorder %s1902_s6, %s1692_s28  ;;  %p1701_p0 = scmp.lt.s32.totalorder %s1692_s28, %s1692_s28 }
  0x35   : > { %p1695_p7 = pnand %p1693_p5, %p1653_p13  ;;  %p1702_p2 = por %p1701_p0, %p1700_p12 }
  0x37   : > { %p1696_p9 = pneg %p1695_p7 }
  0x39   : > { %p1703_p1 = pnand %p1702_p2, %p1696_p9 }
  0x3b   : > { %1706 = shalt.err (!%p1703_p1)
}
  0x3c   : > { %s1813_s12 = smov 128   ;;  %s1814_s13 = smov 8  }
  0x3d   : > { %1590 = dma.hbm_to_vmem [thread:$0]  (!%p1898_p11), %s2092_s3, 8192, %s1902_s6, [#allocation6], %s1813_s12, %s1813_s12, %s1814_s13  }
  0x3e   : > { %s1957_s16 = sadd.s32 1, %s1807_s21   ;;  %s29_s23 = sadd.s32 1, %s1803_s20 }
  0x3f   : > { %s26_s17 = ssub.s32 %s1807_s21, %s1957_s16  ;;  %p36_p6 = scmp.ne.s32.totalorder %s1803_s20, %s1799_s19 }
  0x40   : > { %p27_p13 = scmp.eq.s32.totalorder %s26_s17, 0  ;;  %p37_p10 = scmp.eq.s32.totalorder %s1807_s21, 0 }
  0x41   : > { %p2102_p5 = scmp.eq.s32.totalorder %s1868_s22, 1  ;;  %p1601_p9 = scmp.lt.s32.totalorder %s1807_s21, 2 }
  0x42   : > { %s1966_s27 = scalar_select %p27_p13, %s1803_s20, %s29_s23  }
  0x43   : > { %p38_p3 = por %p37_p10, %p36_p6  ;;  %p1970_p7 = por %p2102_p5, %p36_p6 }
  0x44   : > { %s208_s29 = sand.u32 1, %s1803_s20   ;;  %s1173_s6 = sshll.u32 %s1807_s21, 9 }
  0x45   : > { %s2103_s30 = scalar_select %p1970_p7, 1, 0 }
  0x46   : > { %s1160_s7 = sshll.u32 %s208_s29, 5  ;;  %s1980_s10 = scalar_lea.hbm %s2089_s0, %s1173_s6 }
  0x47   : > { %s212_s11 = scalar_lea.vmem [#allocation2], %s1160_s7  ;;  %p1984_p11 = pnand %p1601_p9, %p38_p3 }
  0x48   : > { %s220_s28 = sshll.u32 %s212_s11, 4  ;;  %s209_s13 = scalar_lea.sflag [#allocation3], %s208_s29  ;;  %s1982_s28 = int_to_ptr.vmem [resolvable:$true] %s220_s28 }
  0x49   : > { %s1707_s14 = scalar_lea.hbm %s1980_s10, 512  ;;  %p1709_p0 = pneg %p1984_p11 }
  0x4a   : > { %p1708_p12 = scmp.ne.s32.totalorder %s1980_s10, %s1707_s14  ;;  %s1712_s23 = scalar_lea.hbm %s2089_s0, 1024 }
  0x4b   : > { %p1713_p13 = scmp.lt.u32.totalorder %s1980_s10, %s2089_s0  ;;  %p1714_p6 = scmp.lt.u32.totalorder %s1712_s23, %s1707_s14 }
  0x4c   : > { %p1710_p2 = pnand %p1709_p0, %p1708_p12  ;;  %p1716_p3 = scmp.lt.u32.totalorder %s1707_s14, %s1980_s10 }
  0x4d   : > { %p1715_p10 = por %p1714_p6, %p1713_p13 }
  0x4e   : > { %p1711_p1 = pneg %p1710_p2 }
  0x4f   : > { %p1717_p5 = por %p1716_p3, %p1715_p10 }
  0x51   : > { %p1718_p9 = pnand %p1717_p5, %p1711_p1 }
  0x53   : > { %1721 = shalt.err (!%p1718_p9)
}
  0x54   : > { %s1722_s29 = scalar_lea.vmem %s1982_s28, 512  ;;  %s1815_s8 = smov [#allocation2]  }
  0x55   : > { %p1723_p12 = scmp.ne.s32.totalorder %s1982_s28, %s1722_s29  ;;  %s1727_s9 = sshll.u32 %s1815_s8, 4  ;;  %s1728_s9 = int_to_ptr.vmem [resolvable:$false] %s1727_s9 }
  0x56   : > { %s1729_s11 = scalar_lea.vmem %s1728_s9, 1024  ;;  %p1730_p4 = scmp.lt.s32.totalorder %s1982_s28, %s1728_s9 }
  0x57   : > { %p1725_p2 = pnand %p1723_p12, %p1709_p0  ;;  %p1731_p13 = scmp.lt.s32.totalorder %s1729_s11, %s1722_s29 }
  0x59   : > { %p1726_p7 = pneg %p1725_p2  ;;  %p1732_p6 = por %p1731_p13, %p1730_p4 }
  0x5b   : > { %p1733_p10 = pnand %p1732_p6, %p1726_p7 }
  0x5d   : > { %1736 = shalt.err (!%p1733_p10)
}
  0x5e   : > { %1594 = dma.hbm_to_vmem [thread:$0]  (!%p1984_p11), %s1980_s10, 512, %s1982_s28, %s209_s13  }
  0x5f   : > { %229 = sbr.rel (%p1887_p8) target bundleno = 698 (0x2ba), region = 40  ;;  %s2016_s14 = sand.u32 (!%p1887_p8), 1, %s1799_s19  }
  0x60   : > { %s1164_s15 = sshll.u32 (!%p1887_p8), %s2016_s14, 5  ;;  %s232_s17 = scalar_lea.sflag (!%p1887_p8), [#allocation3], %s2016_s14 }
  0x61   : > { %s2020_s23 = scalar_lea.vmem (!%p1887_p8), [#allocation2], %s1164_s15  ;;  %p2105_p4 = scmp.ne.s32.totalorder (!%p1887_p8), %s2098_s24, 0 }
  0x66   : > { %1782 = dma.done.wait (%p2105_p4), %s232_s17, 512  }
  0x67   : > { %1784 = vsyncadd (%p2105_p4), %s232_s17, 4294966784  ;;  %p2106_p7 = scmp.eq.s32.totalorder %s1868_s22, 0 }
  0x69   : > { %1786 = dma.done.wait (%p2106_p7), [#allocation6], 40960   ;;  %p2107_p8 = pmov %p2106_p7 }
  0x6a   : > { %v275_v0 = vld [vmem:[#allocation5 + $0x8] sm:$0xff]  ;;  %v277_v2 = vld [vmem:[#allocation5 + $0x18] sm:$0xff]  ;;  %v274_v5 = vld [vmem:[#allocation5] sm:$0xff]  ;;  %s1167_s10 = sshll.u32 %s2016_s14, 3  ;;  %s1170_s13 = sshll.u32 %s1868_s22, 7 }
  0x6b   : > { %1788 = vsyncadd (%p2107_p8), [#allocation6], 4294926336  ;;  %v279_v1 = vld [vmem:[#allocation5 + $0x28] sm:$0xff]  ;;  %v281_v4 = vld [vmem:[#allocation5 + $0x38] sm:$0xff]  ;;  %s269_s7 = scalar_lea.vmem [#allocation8], %s1167_s10  ;;  %s2045_s9 = scalar_lea.hbm %s2094_s5, %s1170_s13 }
  0x6c   : > { %v1244_v3 = vpack.c.bf16 %v279_v1, %v275_v0  ;;  %v278_v6 = vld [vmem:[#allocation5 + $0x20] sm:$0xff]  ;;  %v1372_v7 = vpack.c.bf16 %v281_v4, %v277_v2  ;;  %v276_v9 = vld [vmem:[#allocation5 + $0x10] sm:$0xff]  ;;  %v283_v11 = vld [vmem:[#allocation5 + $0x48] sm:$0xff]  ;;  %s1066_s6 = sshll.u32 %s269_s7, 4  ;;  %s1053_s11 = scalar_lea.sflag [#allocation4], %s2016_s14  ;;  %s2047_s6 = int_to_ptr.vmem [resolvable:$true] %s1066_s6 }
  0x6d   : > { %v1246_v8 = vpack.c.bf16 %v278_v6, %v274_v5  ;;  %v280_v10 = vld [vmem:[#allocation5 + $0x30] sm:$0xff]  ;;  %v287_v13 = vld [vmem:[#allocation5 + $0x68] sm:$0xff]  ;;  %v285_v14 = vld [vmem:[#allocation5 + $0x58] sm:$0xff]  ;;  %s1737_s15 = scalar_lea.vmem %s2047_s6, 128  ;;  %p2108_p0 = scmp.ne.s32.totalorder %s2103_s30, 0 }
  0x6e   : > { %1245 = vmatprep.subr.bf16.mxu0 %v1244_v3  ;;  %v1374_v12 = vpack.c.bf16 %v280_v10, %v276_v9  ;;  %v289_v15 = vld [vmem:[#allocation5 + $0x78] sm:$0xff]  ;;  %1373 = vmatprep.subr.bf16.mxu1 %v1372_v7  ;;  %v1248_v16 = vpack.c.bf16 %v287_v13, %v283_v11  ;;  %v282_v18 = vld [vmem:[#allocation5 + $0x40] sm:$0xff]  ;;  %v284_v20 = vld [vmem:[#allocation5 + $0x50] sm:$0xff]  ;;  %p1738_p11 = scmp.ne.s32.totalorder %s2047_s6, %s1737_s15  ;;  %s1816_s22 = smov [#allocation8]  }
  0x6f   : > { %1247 = vmatpush1.bf16.msra.mxu0 %v1246_v8  ;;  %v1376_v17 = vpack.c.bf16 %v289_v15, %v285_v14  ;;  %v286_v19 = vld [vmem:[#allocation5 + $0x60] sm:$0xff]  ;;  %v288_v22 = vld [vmem:[#allocation5 + $0x70] sm:$0xff]  ;;  %v291_v23 = vld [vmem:[#allocation5 + $0x88] sm:$0xff]  ;;  %s1741_s17 = sshll.u32 %s1816_s22, 4  ;;  %s1742_s17 = int_to_ptr.vmem [resolvable:$false] %s1741_s17 }
  0x70   : > { %1375 = vmatpush1.bf16.msra.mxu1 %v1374_v12  ;;  %v1250_v21 = vpack.c.bf16 %v286_v19, %v282_v18  ;;  %v295_v24 = vld [vmem:[#allocation5 + $0xa8] sm:$0xff]  ;;  %1249 = vmatprep.subr.bf16.mxu0 %v1248_v16  ;;  %v1378_v25 = vpack.c.bf16 %v288_v22, %v284_v20  ;;  %v293_v27 = vld [vmem:[#allocation5 + $0x98] sm:$0xff]  ;;  %v290_v29 = vld [vmem:[#allocation5 + $0x80] sm:$0xff]  ;;  %p1739_p1 = pnand %p1738_p11, %p2108_p0  ;;  %p1744_p5 = scmp.lt.s32.totalorder %s2047_s6, %s1742_s17 }
  0x71   : > { %1377 = vmatprep.subr.bf16.mxu1 %v1376_v17  ;;  %v1252_v26 = vpack.c.bf16 %v295_v24, %v291_v23  ;;  %v297_v28 = vld [vmem:[#allocation5 + $0xb8] sm:$0xff]  ;;  %v294_v31 = vld [vmem:[#allocation5 + $0xa0] sm:$0xff]  ;;  %v292_v32 = vld [vmem:[#allocation5 + $0x90] sm:$0xff] }
  0x72   : > { %v1380_v30 = vpack.c.bf16 %v297_v28, %v293_v27  ;;  %v296_v33 = vld [vmem:[#allocation5 + $0xb0] sm:$0xff]  ;;  %v1254_v34 = vpack.c.bf16 %v294_v31, %v290_v29  ;;  %v299_v35 = vld [vmem:[#allocation5 + $0xc8] sm:$0xff]  ;;  %v301_v37 = vld [vmem:[#allocation5 + $0xd8] sm:$0xff]  ;;  %p1740_p3 = pneg %p1739_p1 }
  0x73   : > { %1251 = vmatpush1.bf16.msra.mxu0 %v1250_v21  ;;  %v303_v36 = vld [vmem:[#allocation5 + $0xe8] sm:$0xff]  ;;  %v1382_v38 = vpack.c.bf16 %v296_v33, %v292_v32  ;;  %v305_v40 = vld [vmem:[#allocation5 + $0xf8] sm:$0xff]  ;;  %v298_v41 = vld [vmem:[#allocation5 + $0xc0] sm:$0xff] }
  0x74   : > { %1379 = vmatpush1.bf16.msra.mxu1 %v1378_v25  ;;  %1253 = vmatprep.subr.bf16.mxu0 %v1252_v26  ;;  %v1256_v39 = vpack.c.bf16 %v303_v36, %v299_v35  ;;  %v302_v42 = vld [vmem:[#allocation5 + $0xe0] sm:$0xff]  ;;  %v1384_v43 = vpack.c.bf16 %v305_v40, %v301_v37  ;;  %v300_v44 = vld [vmem:[#allocation5 + $0xd0] sm:$0xff]  ;;  %v307_v46 = vld [vmem:[#allocation5 + $0x108] sm:$0xff] }
  0x75   : > { %1381 = vmatprep.subr.bf16.mxu1 %v1380_v30  ;;  %v304_v45 = vld [vmem:[#allocation5 + $0xf0] sm:$0xff]  ;;  %v311_v47 = vld [vmem:[#allocation5 + $0x128] sm:$0xff]  ;;  %v309_v48 = vld [vmem:[#allocation5 + $0x118] sm:$0xff]  ;;  %v1258_v50 = vpack.c.bf16 %v302_v42, %v298_v41 }
  0x76   : > { %v313_v49 = vld [vmem:[#allocation5 + $0x138] sm:$0xff]  ;;  %v1386_v51 = vpack.c.bf16 %v304_v45, %v300_v44  ;;  %v1260_v52 = vpack.c.bf16 %v311_v47, %v307_v46  ;;  %v306_v53 = vld [vmem:[#allocation5 + $0x100] sm:$0xff]  ;;  %v308_v55 = vld [vmem:[#allocation5 + $0x110] sm:$0xff] }
  0x77   : > { %1255 = vmatpush1.bf16.msra.mxu0 %v1254_v34  ;;  %v310_v54 = vld [vmem:[#allocation5 + $0x120] sm:$0xff]  ;;  %v1388_v56 = vpack.c.bf16 %v313_v49, %v309_v48  ;;  %v312_v57 = vld [vmem:[#allocation5 + $0x130] sm:$0xff]  ;;  %v315_v58 = vld [vmem:[#allocation5 + $0x148] sm:$0xff] }
  0x78   : > { %1383 = vmatpush1.bf16.msra.mxu1 %v1382_v38  ;;  %1257 = vmatprep.subr.bf16.mxu0 %v1256_v39  ;;  %v319_v59 = vld [vmem:[#allocation5 + $0x168] sm:$0xff]  ;;  %v317_v60 = vld [vmem:[#allocation5 + $0x158] sm:$0xff]  ;;  %v1262_v62 = vpack.c.bf16 %v310_v54, %v306_v53  ;;  %v1390_v63 = vpack.c.bf16 %v312_v57, %v308_v55  ;;  %v314_v1 = vld [vmem:[#allocation5 + $0x140] sm:$0xff] }
  0x79   : > { %1385 = vmatprep.subr.bf16.mxu1 %v1384_v43  ;;  %v321_v61 = vld [vmem:[#allocation5 + $0x178] sm:$0xff]  ;;  %v1264_v0 = vpack.c.bf16 %v319_v59, %v315_v58  ;;  %v318_v2 = vld [vmem:[#allocation5 + $0x160] sm:$0xff]  ;;  %v316_v3 = vld [vmem:[#allocation5 + $0x150] sm:$0xff] }
  0x7a   : > { %v1392_v4 = vpack.c.bf16 %v321_v61, %v317_v60  ;;  %v320_v5 = vld [vmem:[#allocation5 + $0x170] sm:$0xff]  ;;  %v323_v6 = vld [vmem:[#allocation5 + $0x188] sm:$0xff]  ;;  %v325_v8 = vld [vmem:[#allocation5 + $0x198] sm:$0xff]  ;;  %v1266_v10 = vpack.c.bf16 %v318_v2, %v314_v1 }
  0x7b   : > { %1259 = vmatpush1.bf16.msra.mxu0 %v1258_v50  ;;  %v327_v7 = vld [vmem:[#allocation5 + $0x1a8] sm:$0xff]  ;;  %v329_v9 = vld [vmem:[#allocation5 + $0x1b8] sm:$0xff]  ;;  %v1394_v11 = vpack.c.bf16 %v320_v5, %v316_v3  ;;  %v322_v13 = vld [vmem:[#allocation5 + $0x180] sm:$0xff] }
  0x7c   : > { %1387 = vmatpush1.bf16.msra.mxu1 %v1386_v51  ;;  %1261 = vmatprep.subr.bf16.mxu0 %v1260_v52  ;;  %v1268_v12 = vpack.c.bf16 %v327_v7, %v323_v6  ;;  %v326_v14 = vld [vmem:[#allocation5 + $0x1a0] sm:$0xff]  ;;  %v324_v15 = vld [vmem:[#allocation5 + $0x190] sm:$0xff]  ;;  %v1396_v16 = vpack.c.bf16 %v329_v9, %v325_v8  ;;  %v331_v18 = vld [vmem:[#allocation5 + $0x1c8] sm:$0xff] }
  0x7d   : > { %1389 = vmatprep.subr.bf16.mxu1 %v1388_v56  ;;  %v328_v17 = vld [vmem:[#allocation5 + $0x1b0] sm:$0xff]  ;;  %v335_v19 = vld [vmem:[#allocation5 + $0x1e8] sm:$0xff]  ;;  %v333_v20 = vld [vmem:[#allocation5 + $0x1d8] sm:$0xff]  ;;  %v1270_v22 = vpack.c.bf16 %v326_v14, %v322_v13 }
  0x7e   : > { %v337_v21 = vld [vmem:[#allocation5 + $0x1f8] sm:$0xff]  ;;  %v1398_v23 = vpack.c.bf16 %v328_v17, %v324_v15  ;;  %v1272_v24 = vpack.c.bf16 %v335_v19, %v331_v18  ;;  %v330_v25 = vld [vmem:[#allocation5 + $0x1c0] sm:$0xff]  ;;  %v332_v27 = vld [vmem:[#allocation5 + $0x1d0] sm:$0xff] }
  0x7f   : > { %1263 = vmatpush1.bf16.msra.mxu0 %v1262_v62  ;;  %v334_v26 = vld [vmem:[#allocation5 + $0x1e0] sm:$0xff]  ;;  %v1400_v28 = vpack.c.bf16 %v337_v21, %v333_v20  ;;  %v336_v29 = vld [vmem:[#allocation5 + $0x1f0] sm:$0xff]  ;;  %v339_v30 = vld [vmem:[#allocation5 + $0x208] sm:$0xff] }
  0x80   : > { %1391 = vmatpush1.bf16.msra.mxu1 %v1390_v63  ;;  %1265 = vmatprep.subr.bf16.mxu0 %v1264_v0  ;;  %v343_v31 = vld [vmem:[#allocation5 + $0x228] sm:$0xff]  ;;  %v341_v32 = vld [vmem:[#allocation5 + $0x218] sm:$0xff]  ;;  %v1274_v34 = vpack.c.bf16 %v334_v26, %v330_v25  ;;  %v1402_v35 = vpack.c.bf16 %v336_v29, %v332_v27  ;;  %v338_v37 = vld [vmem:[#allocation5 + $0x200] sm:$0xff] }
  0x81   : > { %1393 = vmatprep.subr.bf16.mxu1 %v1392_v4  ;;  %v345_v33 = vld [vmem:[#allocation5 + $0x238] sm:$0xff]  ;;  %v1276_v36 = vpack.c.bf16 %v343_v31, %v339_v30  ;;  %v342_v38 = vld [vmem:[#allocation5 + $0x220] sm:$0xff]  ;;  %v340_v39 = vld [vmem:[#allocation5 + $0x210] sm:$0xff] }
  0x82   : > { %v1404_v40 = vpack.c.bf16 %v345_v33, %v341_v32  ;;  %v344_v41 = vld [vmem:[#allocation5 + $0x230] sm:$0xff]  ;;  %v347_v42 = vld [vmem:[#allocation5 + $0x248] sm:$0xff]  ;;  %v349_v44 = vld [vmem:[#allocation5 + $0x258] sm:$0xff]  ;;  %v1278_v46 = vpack.c.bf16 %v342_v38, %v338_v37 }
  0x83   : > { %1267 = vmatpush1.bf16.msra.mxu0 %v1266_v10  ;;  %v351_v43 = vld [vmem:[#allocation5 + $0x268] sm:$0xff]  ;;  %v353_v45 = vld [vmem:[#allocation5 + $0x278] sm:$0xff]  ;;  %v1406_v47 = vpack.c.bf16 %v344_v41, %v340_v39  ;;  %v346_v49 = vld [vmem:[#allocation5 + $0x240] sm:$0xff] }
  0x84   : > { %1395 = vmatpush1.bf16.msra.mxu1 %v1394_v11  ;;  %1269 = vmatprep.subr.bf16.mxu0 %v1268_v12  ;;  %v1280_v48 = vpack.c.bf16 %v351_v43, %v347_v42  ;;  %v350_v50 = vld [vmem:[#allocation5 + $0x260] sm:$0xff]  ;;  %v348_v51 = vld [vmem:[#allocation5 + $0x250] sm:$0xff]  ;;  %v1408_v52 = vpack.c.bf16 %v353_v45, %v349_v44  ;;  %v355_v54 = vld [vmem:[#allocation5 + $0x288] sm:$0xff] }
  0x85   : > { %1397 = vmatprep.subr.bf16.mxu1 %v1396_v16  ;;  %v352_v53 = vld [vmem:[#allocation5 + $0x270] sm:$0xff]  ;;  %v359_v55 = vld [vmem:[#allocation5 + $0x2a8] sm:$0xff]  ;;  %v357_v56 = vld [vmem:[#allocation5 + $0x298] sm:$0xff]  ;;  %v1282_v58 = vpack.c.bf16 %v350_v50, %v346_v49 }
  0x86   : > { %v361_v57 = vld [vmem:[#allocation5 + $0x2b8] sm:$0xff]  ;;  %v1410_v59 = vpack.c.bf16 %v352_v53, %v348_v51  ;;  %v1284_v60 = vpack.c.bf16 %v359_v55, %v355_v54  ;;  %v354_v61 = vld [vmem:[#allocation5 + $0x280] sm:$0xff]  ;;  %v356_v63 = vld [vmem:[#allocation5 + $0x290] sm:$0xff] }
  0x87   : > { %1271 = vmatpush1.bf16.msra.mxu0 %v1270_v22  ;;  %v358_v62 = vld [vmem:[#allocation5 + $0x2a0] sm:$0xff]  ;;  %v1412_v0 = vpack.c.bf16 %v361_v57, %v357_v56  ;;  %v360_v1 = vld [vmem:[#allocation5 + $0x2b0] sm:$0xff]  ;;  %v363_v2 = vld [vmem:[#allocation5 + $0x2c8] sm:$0xff] }
  0x88   : > { %1399 = vmatpush1.bf16.msra.mxu1 %v1398_v23  ;;  %1273 = vmatprep.subr.bf16.mxu0 %v1272_v24  ;;  %v367_v3 = vld [vmem:[#allocation5 + $0x2e8] sm:$0xff]  ;;  %v365_v4 = vld [vmem:[#allocation5 + $0x2d8] sm:$0xff]  ;;  %v1286_v6 = vpack.c.bf16 %v358_v62, %v354_v61  ;;  %v362_v7 = vld [vmem:[#allocation5 + $0x2c0] sm:$0xff]  ;;  %v1414_v8 = vpack.c.bf16 %v360_v1, %v356_v63 }
  0x89   : > { %1401 = vmatprep.subr.bf16.mxu1 %v1400_v28  ;;  %v369_v5 = vld [vmem:[#allocation5 + $0x2f8] sm:$0xff]  ;;  %v1288_v9 = vpack.c.bf16 %v367_v3, %v363_v2  ;;  %v366_v10 = vld [vmem:[#allocation5 + $0x2e0] sm:$0xff]  ;;  %v364_v11 = vld [vmem:[#allocation5 + $0x2d0] sm:$0xff] }
  0x8a   : > { %v368_v12 = vld [vmem:[#allocation5 + $0x2f0] sm:$0xff]  ;;  %v1416_v13 = vpack.c.bf16 %v369_v5, %v365_v4  ;;  %v371_v14 = vld [vmem:[#allocation5 + $0x308] sm:$0xff]  ;;  %v373_v17 = vld [vmem:[#allocation5 + $0x318] sm:$0xff]  ;;  %v1290_v19 = vpack.c.bf16 %v366_v10, %v362_v7 }
  0x8b   : > { %1275 = vmatpush1.bf16.msra.mxu0 %v1274_v34  ;;  %v375_v15 = vld [vmem:[#allocation5 + $0x328] sm:$0xff]  ;;  %v377_v18 = vld [vmem:[#allocation5 + $0x338] sm:$0xff]  ;;  %v1418_v20 = vpack.c.bf16 %v368_v12, %v364_v11  ;;  %v370_v22 = vld [vmem:[#allocation5 + $0x300] sm:$0xff] }
  0x8c   : > { %1403 = vmatpush1.bf16.msra.mxu1 %v1402_v35  ;;  %1277 = vmatprep.subr.bf16.mxu0 %v1276_v36  ;;  %v271_v16 = vld [vmem:[%s2020_s23 + $0x8] sm:$0xff]  ;;  %v1292_v21 = vpack.c.bf16 %v375_v15, %v371_v14  ;;  %v374_v23 = vld [vmem:[#allocation5 + $0x320] sm:$0xff]  ;;  %v372_v24 = vld [vmem:[#allocation5 + $0x310] sm:$0xff]  ;;  %v1420_v25 = vpack.c.bf16 %v377_v18, %v373_v17 }
  0x8d   : > { %1405 = vmatprep.subr.bf16.mxu1 %v1404_v40  ;;  %616 = vmatprep.mubr.f32.mxu0 %v271_v16  ;;  %v376_v26 = vld [vmem:[#allocation5 + $0x330] sm:$0xff]  ;;  %v379_v27 = vld [vmem:[#allocation5 + $0x348] sm:$0xff]  ;;  %v381_v29 = vld [vmem:[#allocation5 + $0x358] sm:$0xff]  ;;  %v1294_v31 = vpack.c.bf16 %v374_v23, %v370_v22 }
  0x8e   : > { %758 = vmatprep.mubr.f32.mxu1 %v271_v16  ;;  %v383_v28 = vld [vmem:[#allocation5 + $0x368] sm:$0xff]  ;;  %v385_v30 = vld [vmem:[#allocation5 + $0x378] sm:$0xff]  ;;  %v1422_v32 = vpack.c.bf16 %v376_v26, %v372_v24  ;;  %v378_v34 = vld [vmem:[#allocation5 + $0x340] sm:$0xff] }
  0x8f   : > { %1279 = vmatpush1.bf16.msra.mxu0 %v1278_v46  ;;  %v1296_v33 = vpack.c.bf16 %v383_v28, %v379_v27  ;;  %v382_v35 = vld [vmem:[#allocation5 + $0x360] sm:$0xff]  ;;  %v380_v36 = vld [vmem:[#allocation5 + $0x350] sm:$0xff]  ;;  %v1424_v37 = vpack.c.bf16 %v385_v30, %v381_v29  ;;  %v387_v39 = vld [vmem:[#allocation5 + $0x388] sm:$0xff] }
  0x90   : > { %1407 = vmatpush1.bf16.msra.mxu1 %v1406_v47  ;;  %1281 = vmatprep.subr.bf16.mxu0 %v1280_v48  ;;  %v384_v38 = vld [vmem:[#allocation5 + $0x370] sm:$0xff]  ;;  %v391_v40 = vld [vmem:[#allocation5 + $0x3a8] sm:$0xff]  ;;  %v389_v41 = vld [vmem:[#allocation5 + $0x398] sm:$0xff]  ;;  %v1298_v43 = vpack.c.bf16 %v382_v35, %v378_v34 }
  0x91   : > { %1409 = vmatprep.subr.bf16.mxu1 %v1408_v52  ;;  %v393_v42 = vld [vmem:[#allocation5 + $0x3b8] sm:$0xff]  ;;  %v1426_v44 = vpack.c.bf16 %v384_v38, %v380_v36  ;;  %v1300_v45 = vpack.c.bf16 %v391_v40, %v387_v39  ;;  %v386_v46 = vld [vmem:[#allocation5 + $0x380] sm:$0xff]  ;;  %v388_v48 = vld [vmem:[#allocation5 + $0x390] sm:$0xff] }
  0x92   : > { %v390_v47 = vld [vmem:[#allocation5 + $0x3a0] sm:$0xff]  ;;  %v1428_v49 = vpack.c.bf16 %v393_v42, %v389_v41  ;;  %v392_v50 = vld [vmem:[#allocation5 + $0x3b0] sm:$0xff]  ;;  %v395_v51 = vld [vmem:[#allocation5 + $0x3c8] sm:$0xff] }
  0x93   : > { %1283 = vmatpush1.bf16.msra.mxu0 %v1282_v58  ;;  %v399_v52 = vld [vmem:[#allocation5 + $0x3e8] sm:$0xff]  ;;  %v397_v53 = vld [vmem:[#allocation5 + $0x3d8] sm:$0xff]  ;;  %v1302_v55 = vpack.c.bf16 %v390_v47, %v386_v46  ;;  %v1430_v56 = vpack.c.bf16 %v392_v50, %v388_v48  ;;  %v394_v58 = vld [vmem:[#allocation5 + $0x3c0] sm:$0xff] }
  0x94   : > { %1411 = vmatpush1.bf16.msra.mxu1 %v1410_v59  ;;  %1285 = vmatprep.subr.bf16.mxu0 %v1284_v60  ;;  %v401_v54 = vld [vmem:[#allocation5 + $0x3f8] sm:$0xff]  ;;  %v1304_v57 = vpack.c.bf16 %v399_v52, %v395_v51  ;;  %v398_v59 = vld [vmem:[#allocation5 + $0x3e0] sm:$0xff]  ;;  %v396_v60 = vld [vmem:[#allocation5 + $0x3d0] sm:$0xff] }
  0x95   : > { %1413 = vmatprep.subr.bf16.mxu1 %v1412_v0  ;;  %v1432_v61 = vpack.c.bf16 %v401_v54, %v397_v53  ;;  %v400_v62 = vld [vmem:[#allocation5 + $0x3f0] sm:$0xff]  ;;  %v403_v63 = vld [vmem:[#allocation5 + $0x408] sm:$0xff]  ;;  %v405_v1 = vld [vmem:[#allocation5 + $0x418] sm:$0xff]  ;;  %v1306_v3 = vpack.c.bf16 %v398_v59, %v394_v58 }
  0x96   : > { %v407_v0 = vld [vmem:[#allocation5 + $0x428] sm:$0xff]  ;;  %v409_v2 = vld [vmem:[#allocation5 + $0x438] sm:$0xff]  ;;  %v1434_v4 = vpack.c.bf16 %v400_v62, %v396_v60  ;;  %v406_v7 = vld [vmem:[#allocation5 + $0x420] sm:$0xff] }
  0x97   : > { %1287 = vmatpush1.bf16.msra.mxu0 %v1286_v6  ;;  %v1308_v5 = vpack.c.bf16 %v407_v0, %v403_v63  ;;  %v402_v6 = vld [vmem:[#allocation5 + $0x400] sm:$0xff]  ;;  %v408_v10 = vld [vmem:[#allocation5 + $0x430] sm:$0xff]  ;;  %v411_v11 = vld [vmem:[#allocation5 + $0x448] sm:$0xff] }
  0x98   : > { %1415 = vmatpush1.bf16.msra.mxu1 %v1414_v8  ;;  %1289 = vmatprep.subr.bf16.mxu0 %v1288_v9  ;;  %v404_v8 = vld [vmem:[#allocation5 + $0x410] sm:$0xff]  ;;  %v1436_v9 = vpack.c.bf16 %v409_v2, %v405_v1  ;;  %v415_v12 = vld [vmem:[#allocation5 + $0x468] sm:$0xff]  ;;  %v417_v14 = vld [vmem:[#allocation5 + $0x478] sm:$0xff]  ;;  %v1310_v16 = vpack.c.bf16 %v406_v7, %v402_v6 }
  0x99   : > { %1417 = vmatprep.subr.bf16.mxu1 %v1416_v13  ;;  %v413_v13 = vld [vmem:[#allocation5 + $0x458] sm:$0xff]  ;;  %v270_v15 = vld [vmem:[%s2020_s23] sm:$0xff]  ;;  %v1438_v17 = vpack.c.bf16 %v408_v10, %v404_v8  ;;  %v1312_v18 = vpack.c.bf16 %v415_v12, %v411_v11  ;;  %v416_v23 = vld [vmem:[#allocation5 + $0x470] sm:$0xff] }
  0x9a   : > { %v1440_v22 = vpack.c.bf16 %v417_v14, %v413_v13  ;;  %v419_v24 = vld [vmem:[#allocation5 + $0x488] sm:$0xff]  ;;  %v421_v26 = vld [vmem:[#allocation5 + $0x498] sm:$0xff]  ;;  %v424_v35 = vld [vmem:[#allocation5 + $0x4b0] sm:$0xff] }
  0x9b   : > { %1291 = vmatpush1.bf16.msra.mxu0 %v1290_v19  ;;  %v410_v19 = vld [vmem:[#allocation5 + $0x440] sm:$0xff]  ;;  %v425_v27 = vld [vmem:[#allocation5 + $0x4b8] sm:$0xff]  ;;  %v427_v36 = vld [vmem:[#allocation5 + $0x4c8] sm:$0xff] }
  0x9c   : > { %1419 = vmatpush1.bf16.msra.mxu1 %v1418_v20  ;;  %1293 = vmatprep.subr.bf16.mxu0 %v1292_v21  ;;  %v414_v20 = vld [vmem:[#allocation5 + $0x460] sm:$0xff]  ;;  %v412_v21 = vld [vmem:[#allocation5 + $0x450] sm:$0xff]  ;;  %v1444_v34 = vpack.c.bf16 %v425_v27, %v421_v26  ;;  %v429_v38 = vld [vmem:[#allocation5 + $0x4d8] sm:$0xff] }
  0x9d   : > { %1421 = vmatprep.subr.bf16.mxu1 %v1420_v25  ;;  %v423_v25 = vld [vmem:[#allocation5 + $0x4a8] sm:$0xff]  ;;  %v1314_v28 = vpack.c.bf16 %v414_v20, %v410_v19  ;;  %v1442_v29 = vpack.c.bf16 %v416_v23, %v412_v21  ;;  %v433_v39 = vld [vmem:[#allocation5 + $0x4f8] sm:$0xff]  ;;  %v432_v47 = vld [vmem:[#allocation5 + $0x4f0] sm:$0xff] }
  0x9e   : > { %v1316_v30 = vpack.c.bf16 %v423_v25, %v419_v24  ;;  %v1448_v46 = vpack.c.bf16 %v433_v39, %v429_v38  ;;  %v435_v48 = vld [vmem:[#allocation5 + $0x508] sm:$0xff]  ;;  %v437_v50 = vld [vmem:[#allocation5 + $0x518] sm:$0xff]  ;;  %v440_v59 = vld [vmem:[#allocation5 + $0x530] sm:$0xff] }
  0x9f   : > { %1295 = vmatpush1.bf16.msra.mxu0 %v1294_v31  ;;  %v418_v31 = vld [vmem:[#allocation5 + $0x480] sm:$0xff]  ;;  %v441_v51 = vld [vmem:[#allocation5 + $0x538] sm:$0xff]  ;;  %v443_v60 = vld [vmem:[#allocation5 + $0x548] sm:$0xff] }
  0xa0   : > { %1423 = vmatpush1.bf16.msra.mxu1 %v1422_v32  ;;  %1297 = vmatprep.subr.bf16.mxu0 %v1296_v33  ;;  %v422_v32 = vld [vmem:[#allocation5 + $0x4a0] sm:$0xff]  ;;  %v420_v33 = vld [vmem:[#allocation5 + $0x490] sm:$0xff]  ;;  %v1452_v58 = vpack.c.bf16 %v441_v51, %v437_v50  ;;  %v445_v62 = vld [vmem:[#allocation5 + $0x558] sm:$0xff] }
  0xa1   : > { %1425 = vmatprep.subr.bf16.mxu1 %v1424_v37  ;;  %v431_v37 = vld [vmem:[#allocation5 + $0x4e8] sm:$0xff]  ;;  %v1318_v40 = vpack.c.bf16 %v422_v32, %v418_v31  ;;  %v1446_v41 = vpack.c.bf16 %v424_v35, %v420_v33  ;;  %v449_v63 = vld [vmem:[#allocation5 + $0x578] sm:$0xff]  ;;  %v448_v7 = vld [vmem:[#allocation5 + $0x570] sm:$0xff] }
  0xa2   : > { %v1320_v42 = vpack.c.bf16 %v431_v37, %v427_v36  ;;  %v1456_v6 = vpack.c.bf16 %v449_v63, %v445_v62  ;;  %v451_v8 = vld [vmem:[#allocation5 + $0x588] sm:$0xff]  ;;  %v453_v10 = vld [vmem:[#allocation5 + $0x598] sm:$0xff]  ;;  %v450_v13 = vld [vmem:[#allocation5 + $0x580] sm:$0xff] }
  0xa3   : > { %1299 = vmatpush1.bf16.msra.mxu0 %v1298_v43  ;;  %v426_v43 = vld [vmem:[#allocation5 + $0x4c0] sm:$0xff]  ;;  %v457_v11 = vld [vmem:[#allocation5 + $0x5b8] sm:$0xff]  ;;  %v459_v20 = vld [vmem:[#allocation5 + $0x5c8] sm:$0xff] }
  0xa4   : > { %1427 = vmatpush1.bf16.msra.mxu1 %v1426_v44  ;;  %1301 = vmatprep.subr.bf16.mxu0 %v1300_v45  ;;  %v430_v44 = vld [vmem:[#allocation5 + $0x4e0] sm:$0xff]  ;;  %v428_v45 = vld [vmem:[#allocation5 + $0x4d0] sm:$0xff]  ;;  %v1460_v19 = vpack.c.bf16 %v457_v11, %v453_v10  ;;  %v463_v21 = vld [vmem:[#allocation5 + $0x5e8] sm:$0xff] }
  0xa5   : > { %1429 = vmatprep.subr.bf16.mxu1 %v1428_v49  ;;  %v439_v49 = vld [vmem:[#allocation5 + $0x528] sm:$0xff]  ;;  %v1322_v52 = vpack.c.bf16 %v430_v44, %v426_v43  ;;  %v1450_v53 = vpack.c.bf16 %v432_v47, %v428_v45  ;;  %v461_v23 = vld [vmem:[#allocation5 + $0x5d8] sm:$0xff]  ;;  %v1336_v27 = vpack.c.bf16 %v463_v21, %v459_v20  ;;  %v464_v32 = vld [vmem:[#allocation5 + $0x5f0] sm:$0xff] }
  0xa6   : > { %v1324_v54 = vpack.c.bf16 %v439_v49, %v435_v48  ;;  %v465_v24 = vld [vmem:[#allocation5 + $0x5f8] sm:$0xff]  ;;  %v467_v33 = vld [vmem:[#allocation5 + $0x608] sm:$0xff]  ;;  %v472_v44 = vld [vmem:[#allocation5 + $0x630] sm:$0xff] }
  0xa7   : > { %1303 = vmatpush1.bf16.msra.mxu0 %v1302_v55  ;;  %v434_v55 = vld [vmem:[#allocation5 + $0x500] sm:$0xff]  ;;  %v1464_v31 = vpack.c.bf16 %v465_v24, %v461_v23  ;;  %v469_v35 = vld [vmem:[#allocation5 + $0x618] sm:$0xff]  ;;  %v475_v45 = vld [vmem:[#allocation5 + $0x648] sm:$0xff] }
  0xa8   : > { %1431 = vmatpush1.bf16.msra.mxu1 %v1430_v56  ;;  %1305 = vmatprep.subr.bf16.mxu0 %v1304_v57  ;;  %v438_v56 = vld [vmem:[#allocation5 + $0x520] sm:$0xff]  ;;  %v436_v57 = vld [vmem:[#allocation5 + $0x510] sm:$0xff]  ;;  %v473_v36 = vld [vmem:[#allocation5 + $0x638] sm:$0xff] }
  0xa9   : > { %1433 = vmatprep.subr.bf16.mxu1 %v1432_v61  ;;  %v447_v61 = vld [vmem:[#allocation5 + $0x568] sm:$0xff]  ;;  %v1326_v0 = vpack.c.bf16 %v438_v56, %v434_v55  ;;  %v1454_v1 = vpack.c.bf16 %v440_v59, %v436_v57  ;;  %v1468_v43 = vpack.c.bf16 %v473_v36, %v469_v35  ;;  %v477_v47 = vld [vmem:[#allocation5 + $0x658] sm:$0xff]  ;;  %v480_v56 = vld [vmem:[#allocation5 + $0x670] sm:$0xff] }
  0xaa   : > { %v1328_v2 = vpack.c.bf16 %v447_v61, %v443_v60  ;;  %v481_v48 = vld [vmem:[#allocation5 + $0x678] sm:$0xff]  ;;  %v483_v57 = vld [vmem:[#allocation5 + $0x688] sm:$0xff]  ;;  %v498_v24 = vld [vmem:[#allocation5 + $0x700] sm:$0xff] }
  0xab   : > { %1307 = vmatpush1.bf16.msra.mxu0 %v1306_v3  ;;  %v442_v3 = vld [vmem:[#allocation5 + $0x540] sm:$0xff]  ;;  %v1472_v55 = vpack.c.bf16 %v481_v48, %v477_v47  ;;  %v485_v59 = vld [vmem:[#allocation5 + $0x698] sm:$0xff] }
  0xac   : > { %1435 = vmatpush1.bf16.msra.mxu1 %v1434_v4  ;;  %1309 = vmatprep.subr.bf16.mxu0 %v1308_v5  ;;  %v446_v4 = vld [vmem:[#allocation5 + $0x560] sm:$0xff]  ;;  %v444_v5 = vld [vmem:[#allocation5 + $0x550] sm:$0xff]  ;;  %v489_v60 = vld [vmem:[#allocation5 + $0x6b8] sm:$0xff] }
  0xad   : > { %1437 = vmatprep.subr.bf16.mxu1 %v1436_v9  ;;  %v455_v9 = vld [vmem:[#allocation5 + $0x5a8] sm:$0xff]  ;;  %v1330_v12 = vpack.c.bf16 %v446_v4, %v442_v3  ;;  %v1458_v14 = vpack.c.bf16 %v448_v7, %v444_v5  ;;  %v1476_v3 = vpack.c.bf16 %v489_v60, %v485_v59  ;;  %v488_v4 = vld [vmem:[#allocation5 + $0x6b0] sm:$0xff]  ;;  %v493_v7 = vld [vmem:[#allocation5 + $0x6d8] sm:$0xff] }
  0xae   : > { %617 = vmatmul.mubr.f32.vlgmr.msra.gmra.mrb[0].mxu0 %v270_v15  ;;  %v491_v5 = vld [vmem:[#allocation5 + $0x6c8] sm:$0xff]  ;;  %v505_v20 = vld [vmem:[#allocation5 + $0x738] sm:$0xff]  ;;  %v506_v36 = vld [vmem:[#allocation5 + $0x740] sm:$0xff] }
  0xaf   : > { %1311 = vmatpush1.bf16.msra.mxu0 %v1310_v16  ;;  %759 = vmatmul.mubr.f32.vlgmr.msra.gmra.mrb[0].mxu1 %v270_v15  ;;  %v1332_v15 = vpack.c.bf16 %v455_v9, %v451_v8  ;;  %v454_v16 = vld [vmem:[#allocation5 + $0x5a0] sm:$0xff]  ;;  %v497_v8 = vld [vmem:[#allocation5 + $0x6f8] sm:$0xff] }
  0xb0   : > { %1439 = vmatpush1.bf16.msra.mxu1 %v1438_v17  ;;  %1313 = vmatprep.subr.bf16.mxu0 %v1312_v18  ;;  %v452_v17 = vld [vmem:[#allocation5 + $0x590] sm:$0xff]  ;;  %v1334_v25 = vpack.c.bf16 %v454_v16, %v450_v13  ;;  %v494_v13 = vld [vmem:[#allocation5 + $0x6e0] sm:$0xff] }
  0xb1   : > { %1441 = vmatprep.subr.bf16.mxu1 %v1440_v22  ;;  %v456_v18 = vld [vmem:[#allocation5 + $0x5b0] sm:$0xff]  ;;  %v273_v22 = vld [vmem:[%s2020_s23 + $0x18] sm:$0xff]  ;;  %v514_v48 = vld [vmem:[#allocation5 + $0x780] sm:$0xff] }
  0xb2   : > { %687 = vmatprep.mubr.f32.mxu0 %v273_v22  ;;  %829 = vmatprep.mubr.f32.mxu1 %v273_v22  ;;  %v1462_v26 = vpack.c.bf16 %v456_v18, %v452_v17  ;;  %v496_v16 = vld [vmem:[#allocation5 + $0x6f0] sm:$0xff]  ;;  %v499_v17 = vld [vmem:[#allocation5 + $0x708] sm:$0xff]  ;;  %v522_v60 = vld [vmem:[#allocation5 + $0x7c0] sm:$0xff] }
  0xb3   : > { %1315 = vmatpush1.bf16.msra.mxu0 %v1314_v28  ;;  %v458_v28 = vld [vmem:[#allocation5 + $0x5c0] sm:$0xff]  ;;  %v503_v18 = vld [vmem:[#allocation5 + $0x728] sm:$0xff] }
  0xb4   : > { %1443 = vmatpush1.bf16.msra.mxu1 %v1442_v29  ;;  %1317 = vmatprep.subr.bf16.mxu0 %v1316_v30  ;;  %v462_v29 = vld [vmem:[#allocation5 + $0x5e0] sm:$0xff]  ;;  %v460_v30 = vld [vmem:[#allocation5 + $0x5d0] sm:$0xff]  ;;  %v1356_v23 = vpack.c.bf16 %v503_v18, %v499_v17 }
  0xb5   : > { %1445 = vmatprep.subr.bf16.mxu1 %v1444_v34  ;;  %v471_v34 = vld [vmem:[#allocation5 + $0x628] sm:$0xff]  ;;  %v1338_v37 = vpack.c.bf16 %v462_v29, %v458_v28  ;;  %v1466_v38 = vpack.c.bf16 %v464_v32, %v460_v30  ;;  %v504_v28 = vld [vmem:[#allocation5 + $0x730] sm:$0xff]  ;;  %v513_v32 = vld [vmem:[#allocation5 + $0x778] sm:$0xff] }
  0xb6   : > { %v1340_v39 = vpack.c.bf16 %v471_v34, %v467_v33  ;;  %v507_v29 = vld [vmem:[#allocation5 + $0x748] sm:$0xff]  ;;  %v272_v17 = vld [vmem:[%s2020_s23 + $0x10] sm:$0xff]  ;;  %s1743_s23 = scalar_lea.vmem %s1742_s17, 256 }
  0xb7   : > { %1319 = vmatpush1.bf16.msra.mxu0 %v1318_v40  ;;  %v466_v40 = vld [vmem:[#allocation5 + $0x600] sm:$0xff]  ;;  %v511_v30 = vld [vmem:[#allocation5 + $0x768] sm:$0xff]  ;;  %p1745_p9 = scmp.lt.s32.totalorder %s1743_s23, %s1737_s15 }
  0xb8   : > { %1447 = vmatpush1.bf16.msra.mxu1 %v1446_v41  ;;  %1321 = vmatprep.subr.bf16.mxu0 %v1320_v42  ;;  %v470_v41 = vld [vmem:[#allocation5 + $0x620] sm:$0xff]  ;;  %v468_v42 = vld [vmem:[#allocation5 + $0x610] sm:$0xff]  ;;  %v1360_v35 = vpack.c.bf16 %v511_v30, %v507_v29  ;;  %v893_v29 = vld [vmem:[#allocation7 + $0x1a8] sm:$0xff] }
  0xb9   : > { %1449 = vmatprep.subr.bf16.mxu1 %v1448_v46  ;;  %v479_v46 = vld [vmem:[#allocation5 + $0x668] sm:$0xff]  ;;  %v1342_v49 = vpack.c.bf16 %v470_v41, %v466_v40  ;;  %v1470_v50 = vpack.c.bf16 %v472_v44, %v468_v42  ;;  %v512_v40 = vld [vmem:[#allocation5 + $0x770] sm:$0xff]  ;;  %v521_v44 = vld [vmem:[#allocation5 + $0x7b8] sm:$0xff]  ;;  %p1746_p12 = por %p1745_p9, %p1744_p5 }
  0xba   : > { %v1344_v51 = vpack.c.bf16 %v479_v46, %v475_v45  ;;  %v515_v41 = vld [vmem:[#allocation5 + $0x788] sm:$0xff] }
  0xbb   : > { %1323 = vmatpush1.bf16.msra.mxu0 %v1322_v52  ;;  %v474_v52 = vld [vmem:[#allocation5 + $0x640] sm:$0xff]  ;;  %v519_v42 = vld [vmem:[#allocation5 + $0x7a8] sm:$0xff]  ;;  %p1747_p2 = pnand %p1746_p12, %p1740_p3 }
  0xbc   : > { %1451 = vmatpush1.bf16.msra.mxu1 %v1450_v53  ;;  %1325 = vmatprep.subr.bf16.mxu0 %v1324_v54  ;;  %v478_v53 = vld [vmem:[#allocation5 + $0x660] sm:$0xff]  ;;  %v476_v54 = vld [vmem:[#allocation5 + $0x650] sm:$0xff]  ;;  %v1364_v47 = vpack.c.bf16 %v519_v42, %v515_v41  ;;  %v895_v41 = vld [vmem:[#allocation7 + $0x1b8] sm:$0xff] }
  0xbd   : > { %1453 = vmatprep.subr.bf16.mxu1 %v1452_v58  ;;  %v487_v58 = vld [vmem:[#allocation5 + $0x6a8] sm:$0xff]  ;;  %v1346_v61 = vpack.c.bf16 %v478_v53, %v474_v52  ;;  %v1474_v62 = vpack.c.bf16 %v480_v56, %v476_v54  ;;  %v520_v52 = vld [vmem:[#allocation5 + $0x7b0] sm:$0xff]  ;;  %v529_v56 = vld [vmem:[#allocation5 + $0x7f8] sm:$0xff] }
  0xbe   : > { %v1348_v63 = vpack.c.bf16 %v487_v58, %v483_v57  ;;  %v523_v53 = vld [vmem:[#allocation5 + $0x7c8] sm:$0xff] }
  0xbf   : > { %1327 = vmatpush1.bf16.msra.mxu0 %v1326_v0  ;;  %v482_v0 = vld [vmem:[#allocation5 + $0x680] sm:$0xff]  ;;  %v527_v54 = vld [vmem:[#allocation5 + $0x7e8] sm:$0xff] }
  0xc0   : > { %1455 = vmatpush1.bf16.msra.mxu1 %v1454_v1  ;;  %1329 = vmatprep.subr.bf16.mxu0 %v1328_v2  ;;  %v486_v1 = vld [vmem:[#allocation5 + $0x6a0] sm:$0xff]  ;;  %v484_v2 = vld [vmem:[#allocation5 + $0x690] sm:$0xff]  ;;  %v1368_v59 = vpack.c.bf16 %v527_v54, %v523_v53  ;;  %v865_v53 = vld [vmem:[#allocation7 + $0xc8] sm:$0xff] }
  0xc1   : > { %1457 = vmatprep.subr.bf16.mxu1 %v1456_v6  ;;  %v495_v6 = vld [vmem:[#allocation5 + $0x6e8] sm:$0xff]  ;;  %v1350_v9 = vpack.c.bf16 %v486_v1, %v482_v0  ;;  %v1478_v10 = vpack.c.bf16 %v488_v4, %v484_v2  ;;  %v528_v0 = vld [vmem:[#allocation5 + $0x7f0] sm:$0xff]  ;;  %v856_v1 = vld [vmem:[#allocation7 + $0x80] sm:$0xff] }
  0xc2   : > { %v1352_v11 = vpack.c.bf16 %v495_v6, %v491_v5  ;;  %v857_v2 = vld [vmem:[#allocation7 + $0x88] sm:$0xff]  ;;  %v896_v54 = vld [vmem:[#allocation7 + $0x1c0] sm:$0xff] }
  0xc3   : > { %1331 = vmatpush1.bf16.msra.mxu0 %v1330_v12  ;;  %v490_v12 = vld [vmem:[#allocation5 + $0x6c0] sm:$0xff]  ;;  %v889_v4 = vld [vmem:[#allocation7 + $0x188] sm:$0xff] }
  0xc4   : > { %1459 = vmatpush1.bf16.msra.mxu1 %v1458_v14  ;;  %1333 = vmatprep.subr.bf16.mxu0 %v1332_v15  ;;  %v492_v14 = vld [vmem:[#allocation5 + $0x6d0] sm:$0xff]  ;;  %v1480_v15 = vpack.c.bf16 %v497_v8, %v493_v7  ;;  %v1354_v21 = vpack.c.bf16 %v494_v13, %v490_v12  ;;  %v1500_v7 = vpack.c.bf16 %v857_v2, %v856_v1  ;;  %v840_v8 = vld [vmem:[#allocation7] sm:$0xff]  ;;  %v873_v12 = vld [vmem:[#allocation7 + $0x108] sm:$0xff] }
  0xc5   : > { %1461 = vmatprep.subr.bf16.mxu1 %v1460_v19  ;;  %v501_v19 = vld [vmem:[#allocation5 + $0x718] sm:$0xff]  ;;  %v1482_v22 = vpack.c.bf16 %v496_v16, %v492_v14  ;;  %v858_v13 = vld [vmem:[#allocation7 + $0x90] sm:$0xff] }
  0xc6   : > { %v859_v14 = vld [vmem:[#allocation7 + $0x98] sm:$0xff]  ;;  %v898_v2 = vld [vmem:[#allocation7 + $0x1d0] sm:$0xff] }
  0xc7   : > { %1335 = vmatpush1.bf16.msra.mxu0 %v1334_v25  ;;  %v502_v25 = vld [vmem:[#allocation5 + $0x720] sm:$0xff]  ;;  %v891_v16 = vld [vmem:[#allocation7 + $0x198] sm:$0xff] }
  0xc8   : > { %1463 = vmatpush1.bf16.msra.mxu1 %v1462_v26  ;;  %1337 = vmatprep.subr.bf16.mxu0 %v1336_v27  ;;  %v500_v26 = vld [vmem:[#allocation5 + $0x710] sm:$0xff]  ;;  %v1484_v27 = vpack.c.bf16 %v505_v20, %v501_v19  ;;  %v1358_v33 = vpack.c.bf16 %v502_v25, %v498_v24  ;;  %v1504_v20 = vpack.c.bf16 %v859_v14, %v858_v13  ;;  %v875_v25 = vld [vmem:[#allocation7 + $0x118] sm:$0xff]  ;;  %v869_v13 = vld [vmem:[#allocation7 + $0xe8] sm:$0xff] }
  0xc9   : > { %1465 = vmatprep.subr.bf16.mxu1 %v1464_v31  ;;  %v509_v31 = vld [vmem:[#allocation5 + $0x758] sm:$0xff]  ;;  %v1486_v34 = vpack.c.bf16 %v504_v28, %v500_v26  ;;  %v860_v26 = vld [vmem:[#allocation7 + $0xa0] sm:$0xff] }
  0xca   : > { %v892_v28 = vld [vmem:[#allocation7 + $0x1a0] sm:$0xff]  ;;  %v867_v1 = vld [vmem:[#allocation7 + $0xd8] sm:$0xff] }
  0xcb   : > { %1339 = vmatpush1.bf16.msra.mxu0 %v1338_v37  ;;  %v510_v37 = vld [vmem:[#allocation5 + $0x760] sm:$0xff] }
  0xcc   : > { %1467 = vmatpush1.bf16.msra.mxu1 %v1466_v38  ;;  %1341 = vmatprep.subr.bf16.mxu0 %v1340_v39  ;;  %v508_v38 = vld [vmem:[#allocation5 + $0x750] sm:$0xff]  ;;  %v1488_v39 = vpack.c.bf16 %v513_v32, %v509_v31  ;;  %v1362_v45 = vpack.c.bf16 %v510_v37, %v506_v36  ;;  %v1540_v36 = vpack.c.bf16 %v893_v29, %v892_v28  ;;  %v877_v37 = vld [vmem:[#allocation7 + $0x128] sm:$0xff]  ;;  %v900_v14 = vld [vmem:[#allocation7 + $0x1e0] sm:$0xff] }
  0xcd   : > { %1469 = vmatprep.subr.bf16.mxu1 %v1468_v43  ;;  %v517_v43 = vld [vmem:[#allocation5 + $0x798] sm:$0xff]  ;;  %v1490_v46 = vpack.c.bf16 %v512_v40, %v508_v38  ;;  %v862_v38 = vld [vmem:[#allocation7 + $0xb0] sm:$0xff] }
  0xce   : > { %v894_v40 = vld [vmem:[#allocation7 + $0x1b0] sm:$0xff] }
  0xcf   : > { %1343 = vmatpush1.bf16.msra.mxu0 %v1342_v49  ;;  %v518_v49 = vld [vmem:[#allocation5 + $0x7a0] sm:$0xff] }
  0xd0   : > { %1471 = vmatpush1.bf16.msra.mxu1 %v1470_v50  ;;  %1345 = vmatprep.subr.bf16.mxu0 %v1344_v51  ;;  %v516_v50 = vld [vmem:[#allocation5 + $0x790] sm:$0xff]  ;;  %v1492_v51 = vpack.c.bf16 %v521_v44, %v517_v43  ;;  %v1366_v57 = vpack.c.bf16 %v518_v49, %v514_v48  ;;  %v879_v49 = vld [vmem:[#allocation7 + $0x138] sm:$0xff] }
  0xd1   : > { %1473 = vmatprep.subr.bf16.mxu1 %v1472_v55  ;;  %v525_v55 = vld [vmem:[#allocation5 + $0x7d8] sm:$0xff]  ;;  %v1494_v58 = vpack.c.bf16 %v520_v52, %v516_v50  ;;  %v878_v48 = vld [vmem:[#allocation7 + $0x130] sm:$0xff]  ;;  %v864_v52 = vld [vmem:[#allocation7 + $0xc0] sm:$0xff] }
  0xd3   : > { %1347 = vmatpush1.bf16.msra.mxu0 %v1346_v61  ;;  %v526_v61 = vld [vmem:[#allocation5 + $0x7e0] sm:$0xff] }
  0xd4   : > { %1475 = vmatpush1.bf16.msra.mxu1 %v1474_v62  ;;  %1349 = vmatprep.subr.bf16.mxu0 %v1348_v63  ;;  %v524_v62 = vld [vmem:[#allocation5 + $0x7d0] sm:$0xff]  ;;  %v1496_v63 = vpack.c.bf16 %v529_v56, %v525_v55  ;;  %v1370_v5 = vpack.c.bf16 %v526_v61, %v522_v60  ;;  %v1516_v55 = vpack.c.bf16 %v865_v53, %v864_v52  ;;  %v897_v56 = vld [vmem:[#allocation7 + $0x1c8] sm:$0xff]  ;;  %v880_v60 = vld [vmem:[#allocation7 + $0x140] sm:$0xff] }
  0xd5   : > { %1477 = vmatprep.subr.bf16.mxu1 %v1476_v3  ;;  %v888_v3 = vld [vmem:[#allocation7 + $0x180] sm:$0xff]  ;;  %v1498_v6 = vpack.c.bf16 %v528_v0, %v524_v62  ;;  %v881_v62 = vld [vmem:[#allocation7 + $0x148] sm:$0xff]  ;;  %v866_v0 = vld [vmem:[#allocation7 + $0xd0] sm:$0xff] }
  0xd7   : > { %1351 = vmatpush1.bf16.msra.mxu0 %v1350_v9  ;;  %v841_v9 = vld [vmem:[#allocation7 + $0x8] sm:$0xff] }
  0xd8   : > { %1479 = vmatpush1.bf16.msra.mxu1 %v1478_v10  ;;  %1353 = vmatprep.subr.bf16.mxu0 %v1352_v11  ;;  %v872_v10 = vld [vmem:[#allocation7 + $0x100] sm:$0xff]  ;;  %v1532_v11 = vpack.c.bf16 %v889_v4, %v888_v3  ;;  %v1502_v18 = vpack.c.bf16 %v841_v9, %v840_v8  ;;  %v1520_v3 = vpack.c.bf16 %v867_v1, %v866_v0  ;;  %v899_v4 = vld [vmem:[#allocation7 + $0x1d8] sm:$0xff]  ;;  %v882_v9 = vld [vmem:[#allocation7 + $0x150] sm:$0xff] }
  0xd9   : > { %1481 = vmatprep.subr.bf16.mxu1 %v1480_v15  ;;  %v890_v15 = vld [vmem:[#allocation7 + $0x190] sm:$0xff]  ;;  %v1534_v19 = vpack.c.bf16 %v873_v12, %v872_v10  ;;  %v883_v10 = vld [vmem:[#allocation7 + $0x158] sm:$0xff]  ;;  %v868_v12 = vld [vmem:[#allocation7 + $0xe0] sm:$0xff] }
  0xda   : > { %v1536_v24 = vpack.c.bf16 %v891_v16, %v890_v15  ;;  %v1524_v15 = vpack.c.bf16 %v869_v13, %v868_v12  ;;  %v901_v16 = vld [vmem:[#allocation7 + $0x1e8] sm:$0xff] }
  0xdb   : > { %1355 = vmatpush1.bf16.msra.mxu0 %v1354_v21  ;;  %v842_v21 = vld [vmem:[#allocation7 + $0x10] sm:$0xff] }
  0xdc   : > { %1483 = vmatpush1.bf16.msra.mxu1 %v1482_v22  ;;  %1357 = vmatprep.subr.bf16.mxu0 %v1356_v23  ;;  %v843_v22 = vld [vmem:[#allocation7 + $0x18] sm:$0xff]  ;;  %v874_v23 = vld [vmem:[#allocation7 + $0x110] sm:$0xff] }
  0xdd   : > { %1485 = vmatprep.subr.bf16.mxu1 %v1484_v27  ;;  %v861_v27 = vld [vmem:[#allocation7 + $0xa8] sm:$0xff]  ;;  %v1506_v30 = vpack.c.bf16 %v843_v22, %v842_v21  ;;  %v1538_v31 = vpack.c.bf16 %v875_v25, %v874_v23  ;;  %v884_v21 = vld [vmem:[#allocation7 + $0x160] sm:$0xff]  ;;  %v870_v23 = vld [vmem:[#allocation7 + $0xf0] sm:$0xff] }
  0xde   : > { %v1508_v32 = vpack.c.bf16 %v861_v27, %v860_v26  ;;  %v885_v22 = vld [vmem:[#allocation7 + $0x168] sm:$0xff]  ;;  %v871_v25 = vld [vmem:[#allocation7 + $0xf8] sm:$0xff]  ;;  %v902_v26 = vld [vmem:[#allocation7 + $0x1f0] sm:$0xff] }
  0xdf   : > { %1359 = vmatpush1.bf16.msra.mxu0 %v1358_v33  ;;  %v844_v33 = vld [vmem:[#allocation7 + $0x20] sm:$0xff]  ;;  %v903_v27 = vld [vmem:[#allocation7 + $0x1f8] sm:$0xff]  ;;  %v1528_v28 = vpack.c.bf16 %v871_v25, %v870_v23 }
  0xe0   : > { %1487 = vmatpush1.bf16.msra.mxu1 %v1486_v34  ;;  %1361 = vmatprep.subr.bf16.mxu0 %v1360_v35  ;;  %v845_v34 = vld [vmem:[#allocation7 + $0x28] sm:$0xff]  ;;  %v876_v35 = vld [vmem:[#allocation7 + $0x120] sm:$0xff]  ;;  %v1560_v29 = vpack.c.bf16 %v903_v27, %v902_v26 }
  0xe1   : > { %1489 = vmatprep.subr.bf16.mxu1 %v1488_v39  ;;  %v863_v39 = vld [vmem:[#allocation7 + $0xb8] sm:$0xff]  ;;  %v1510_v42 = vpack.c.bf16 %v845_v34, %v844_v33  ;;  %v1542_v43 = vpack.c.bf16 %v877_v37, %v876_v35 }
  0xe2   : > { %v1512_v44 = vpack.c.bf16 %v863_v39, %v862_v38  ;;  %v887_v34 = vld [vmem:[#allocation7 + $0x178] sm:$0xff]  ;;  %v530_v39 = vld [vmem:[%s2091_s2] sm:$0xf] }
  0xe3   : > { %1363 = vmatpush1.bf16.msra.mxu0 %v1362_v45  ;;  %v846_v45 = vld [vmem:[#allocation7 + $0x30] sm:$0xff] }
  0xe4   : > { %1491 = vmatpush1.bf16.msra.mxu1 %v1490_v46  ;;  %1365 = vmatprep.subr.bf16.mxu0 %v1364_v47  ;;  %v847_v46 = vld [vmem:[#allocation7 + $0x38] sm:$0xff]  ;;  %v1544_v47 = vpack.c.bf16 %v895_v41, %v894_v40 }
  0xe5   : > { %1493 = vmatprep.subr.bf16.mxu1 %v1492_v51  ;;  %v1514_v50 = vpack.c.bf16 %v847_v46, %v846_v45  ;;  %v1546_v51 = vpack.c.bf16 %v879_v49, %v878_v48 }
  0xe7   : > { %1367 = vmatpush1.bf16.msra.mxu0 %v1366_v57  ;;  %v1548_v57 = vpack.c.bf16 %v897_v56, %v896_v54 }
  0xe8   : > { %1495 = vmatpush1.bf16.msra.mxu1 %v1494_v58  ;;  %1369 = vmatprep.subr.bf16.mxu0 %v1368_v59  ;;  %v848_v58 = vld [vmem:[#allocation7 + $0x40] sm:$0xff]  ;;  %v849_v59 = vld [vmem:[#allocation7 + $0x48] sm:$0xff] }
  0xe9   : > { %1497 = vmatprep.subr.bf16.mxu1 %v1496_v63  ;;  %v1518_v61 = vpack.c.bf16 %v849_v59, %v848_v58  ;;  %v1550_v63 = vpack.c.bf16 %v881_v62, %v880_v60 }
  0xeb   : > { %1371 = vmatpush1.bf16.msra.mxu0 %v1370_v5  ;;  %v850_v5 = vld [vmem:[#allocation7 + $0x50] sm:$0xff] }
  0xec   : > { %1499 = vmatpush1.bf16.msra.mxu1 %v1498_v6  ;;  %1501 = vmatprep.subr.bf16.mxu0 %v1500_v7  ;;  %v851_v6 = vld [vmem:[#allocation7 + $0x58] sm:$0xff]  ;;  %v1552_v7 = vpack.c.bf16 %v899_v4, %v898_v2 }
  0xed   : > { %1533 = vmatprep.subr.bf16.mxu1 %v1532_v11  ;;  %v1522_v8 = vpack.c.bf16 %v851_v6, %v850_v5  ;;  %v1554_v11 = vpack.c.bf16 %v883_v10, %v882_v9 }
  0xee   : > { %688 = vmatmul.mubr.f32.vlgmr.msra.gmra.mrb[0].mxu0 %v272_v17 }
  0xef   : > { %830 = vmatmul.mubr.f32.vlgmr.msra.gmra.mrb[0].mxu1 %v272_v17  ;;  %1503 = vmatpush3.bf16.msra.mxu0 %v1502_v18  ;;  %v852_v17 = vld [vmem:[#allocation7 + $0x60] sm:$0xff]  ;;  %v853_v18 = vld [vmem:[#allocation7 + $0x68] sm:$0xff] }
  0xf0   : > { %1535 = vmatpush3.bf16.msra.mxu1 %v1534_v19  ;;  %1505 = vmatprep.subr.bf16.mxu0 %v1504_v20  ;;  %v1556_v19 = vpack.c.bf16 %v901_v16, %v900_v14  ;;  %v1526_v20 = vpack.c.bf16 %v853_v18, %v852_v17 }
  0xf1   : > { %1537 = vmatprep.subr.bf16.mxu1 %v1536_v24  ;;  %v1558_v24 = vpack.c.bf16 %v885_v22, %v884_v21 }
  0xf3   : > { %1507 = vmatpush3.bf16.msra.mxu0 %v1506_v30  ;;  %v854_v30 = vld [vmem:[#allocation7 + $0x70] sm:$0xff] }
  0xf4   : > { %1539 = vmatpush3.bf16.msra.mxu1 %v1538_v31  ;;  %1509 = vmatprep.subr.bf16.mxu0 %v1508_v32  ;;  %v855_v31 = vld [vmem:[#allocation7 + $0x78] sm:$0xff]  ;;  %v886_v32 = vld [vmem:[#allocation7 + $0x170] sm:$0xff] }
  0xf5   : > { %1541 = vmatprep.subr.bf16.mxu1 %v1540_v36  ;;  %v1530_v33 = vpack.c.bf16 %v855_v31, %v854_v30  ;;  %v1562_v35 = vpack.c.bf16 %v887_v34, %v886_v32  ;;  %v532_v36 = vlaneseq }
  0xf7   : > { %1511 = vmatpush3.bf16.msra.mxu0 %v1510_v42  ;;  %v533_v37 = vshrl.u32 %v532_v36, 7 }
  0xf8   : > { %1543 = vmatpush3.bf16.msra.mxu1 %v1542_v43  ;;  %1513 = vmatprep.subr.bf16.mxu0 %v1512_v44 }
  0xf9   : > { %1545 = vmatprep.subr.bf16.mxu1 %v1544_v47  ;;  %v534_v38 = vsub.s32 0, %v533_v37  ;;  %v538_v40 = vsub.s32 1, %v533_v37  ;;  %v542_v41 = vsub.s32 2, %v533_v37  ;;  %v546_v42 = vsub.s32 3, %v533_v37 }
  0xfb   : > { %1515 = vmatpush3.bf16.msra.mxu0 %v1514_v50  ;;  %v535_v43 = vrot.slane %v530_v39, %v534_v38  ;;  %v539_v44 = vrot.slane %v530_v39, %v538_v40  ;;  %v543_v45 = vrot.slane %v530_v39, %v542_v41  ;;  %v547_v46 = vrot.slane %v530_v39, %v546_v42 }
  0xfc   : > { %1547 = vmatpush3.bf16.msra.mxu1 %v1546_v51  ;;  %1517 = vmatprep.subr.bf16.mxu0 %v1516_v55 }
  0xfd   : > { %1549 = vmatprep.subr.bf16.mxu1 %v1548_v57 }
  0xff   : > { %1519 = vmatpush3.bf16.msra.mxu0 %v1518_v61  ;;  %v1168_v61 = vld [vmem:[%s2093_s4] ss:$0 sm:$0xff] }
 0x100   : > { %1551 = vmatpush3.bf16.msra.mxu1 %v1550_v63  ;;  %1521 = vmatprep.subr.bf16.mxu0 %v1520_v3 }
 0x101   : > { %1553 = vmatprep.subr.bf16.mxu1 %v1552_v7 }
 0x103   : > { %1523 = vmatpush3.bf16.msra.mxu0 %v1522_v8 }
 0x104   : > { %1555 = vmatpush3.bf16.msra.mxu1 %v1554_v11  ;;  %1525 = vmatprep.subr.bf16.mxu0 %v1524_v15 }
 0x105   : > { %1557 = vmatprep.subr.bf16.mxu1 %v1556_v19 }
 0x107   : > { %1527 = vmatpush3.bf16.msra.mxu0 %v1526_v20 }
 0x108   : > { %1559 = vmatpush3.bf16.msra.mxu1 %v1558_v24  ;;  %1529 = vmatprep.subr.bf16.mxu0 %v1528_v28 }
 0x109   : > { %1561 = vmatprep.subr.bf16.mxu1 %v1560_v29 }
 0x10b   : > { %1531 = vmatpush3.bf16.msra.mxu0 %v1530_v33 }
 0x10c   : > { %1563 = vmatpush3.bf16.msra.mxu1 %v1562_v35 }
 0x1c1   : > { %v689_v47 = vpop.f32.mrb[0].mxu0 }
 0x1c2   : > { %v1564_v48 = vadd.f32 %v689_v47, %v535_v43  ;;  %v831_v49 = vpop.f32.mrb[0].mxu1  ;;  %v691_v50 = vpop.f32.mrb[1].mxu0 }
 0x1c3   : > { %v1565_v51 = vadd.f32 %v691_v50, %v539_v44  ;;  %v833_v52 = vpop.f32.mrb[1].mxu1  ;;  %v1566_v53 = vadd.f32 %v831_v49, %v543_v45 }
 0x1c4   : > { %v1567_v54 = vadd.f32 %v833_v52, %v547_v46  ;;  %1643 = vtanh.f32 %v1564_v48 }
 0x1c5   : > { %1645 = vtanh.f32 %v1565_v51 }
 0x1c6   : > { %1647 = vtanh.f32 %v1567_v54 }
 0x1c7   : > { %1649 = vtanh.f32 %v1566_v53 }
 0x1ce   : > { %v1644_v55 = vpop.eup %1643 }
 0x1cf   : > { %v1646_v56 = vpop.eup %1645 }
 0x1d0   : > { %v1648_v57 = vpop.eup %1647  ;;  %975 = vmatprep.mubr.f32.mxu0 %v1646_v56 }
 0x1d1   : > { %v1650_v58 = vpop.eup %1649  ;;  %1045 = vmatprep.mubr.f32.mxu1 %v1648_v57  ;;  %976 = vmatmul.mubr.f32.vlgmr.msra.gmra.mrb[2].mxu0 %v1644_v55 }
 0x1d2   : > { %1046 = vmatmul.mubr.f32.vlgmr.msra.gmra.mrb[2].mxu1 %v1650_v58 }
 0x2a4   : > { %v1206_v59 = vpop.f32.mrb[2].mxu0 }
 0x2a5   : > { %v1241_v60 = vpop.f32.mrb[2].mxu1  ;;  %v1207_v62 = vpop.f32.mrb[3].mxu0 }
 0x2a6   : > { %v1208_v63 = vadd.f32 %v1207_v62, %v1206_v59  ;;  %v1242_v0 = vpop.f32.mrb[3].mxu1 }
 0x2a7   : > { %v1243_v1 = vadd.f32 %v1242_v0, %v1241_v60 }
 0x2a8   : > { %v978_v2 = vadd.f32 %v1208_v63, %v1168_v61 }
 0x2aa   : > { %v1048_v3 = vadd.f32 %v1243_v1, %v978_v2 }
 0x2ac   : > { %1051 = vst [vmem:[%s269_s7] sm:$0xff] %v1048_v3 }
 0x2ad   : > { %1750 = shalt.err (!%p1747_p2)
}
 0x2ae   : > { %s1751_s14 = scalar_lea.hbm %s2045_s9, 128  ;;  %s1755_s10 = scalar_lea.hbm %s2094_s5, 256 }
 0x2af   : > { %p1752_p13 = scmp.ne.s32.totalorder %s2045_s9, %s1751_s14  ;;  %p1756_p4 = scmp.lt.u32.totalorder %s2045_s9, %s2094_s5 }
 0x2b0   : > { %p1757_p7 = scmp.lt.u32.totalorder %s1755_s10, %s1751_s14  ;;  %p1759_p11 = scmp.lt.u32.totalorder %s1751_s14, %s2045_s9 }
 0x2b1   : > { %p1753_p6 = pnand %p1752_p13, %p2108_p0 }
 0x2b2   : > { %p1758_p8 = por %p1757_p7, %p1756_p4 }
 0x2b3   : > { %p1754_p10 = pneg %p1753_p6 }
 0x2b4   : > { %p1760_p1 = por %p1759_p11, %p1758_p8 }
 0x2b6   : > { %p1761_p3 = pnand %p1760_p1, %p1754_p10 }
 0x2b8   : > { %1764 = shalt.err (!%p1761_p3)
}
 0x2b9   : > { %1582 = dma.vmem_to_hbm [thread:$0]  (%p2108_p0), %s2047_s6, 128, %s2045_s9, %s1053_s11  }
 0x2ba PF: > { %s1078_s13 = sand.u32 1, %s1795_s18   ;;  %p2109_p5 = scmp.ne.s32.totalorder %s2099_s25, 0 }
 0x2bb   : > { %p2110_p9 = scmp.ge.s32.totalorder %s1807_s21, 2  ;;  %s1079_s7 = scalar_lea.sflag [#allocation4], %s1078_s13 }
 0x2bd   : > { %p1596_p12 = pnand %p2110_p9, %p2109_p5 }
 0x2bf   : > { %1790 = dma.done.wait (!%p1596_p12), %s1079_s7, 128  }
 0x2c0   : > { %1792 = vsyncadd (!%p1596_p12), %s1079_s7, 4294967168  ;;  %p19_p2 = scmp.ge.s32.totalorder %s1957_s16, 4   ;;  %s2111_s18 = smov %s1799_s19 }
 0x2c1   : > { %s2112_s19 = smov %s1803_s20  ;;  %s2113_s20 = smov %s1966_s27 }
 0x2c2   : > { %s2114_s21 = smov %s1957_s16  ;;  %21 = sbr.rel (!%p19_p2) target bundleno = 6 (0x6), region = 93 }
 0x2c9   :  { %1084 = vsyncpa [#allocation3], 1 }
 0x2ca   :  { %1086 = vsyncpa [#allocation3 + $0x1], 1 }
 0x2cb   :  { %1087 = vsyncpa [#allocation6], 1 }
 0x2cc   :  { %1088 = vsyncpa [#allocation4], 1 }
 0x2cd   :  { %1090 = vsyncpa [#allocation4 + $0x1], 1 }

</bundles_post_ra>
